<compile_context>
chip_gen: v7x
topology: tpu7x:2x2x1
jax: 0.10.0
libtpu: 0.0.40
codegen_flags: <defaults>
</compile_context>

<pallas_src>
import jax
import jax.numpy as jnp
from jax.experimental import pallas as pl
from jax.experimental.pallas import tpu as pltpu


_LANE_CHOICES = (1024, 512, 256, 128)   # lane-dense last dims (multiples of 128)
_TARGET_TILE_BYTES = 2 * 1024 * 1024    # ~2 MiB per tile (512 x 1024 x f32)
_VMEM_LIMIT_BYTES = 32 * 1024 * 1024


def _tanh_scale_kernel(x_ref, o_ref):
    # y = (tanh(x) + 1) / 2, folded into one fma-style epilogue.
    # tanh rides the EUP slot; the mul/add epilogue rides the (unsaturated) VPU.
    o_ref[...] = jnp.tanh(x_ref[...]) * 0.5 + 0.5


def _pick_lanes(total):
    for lanes in _LANE_CHOICES:
        if total % lanes == 0:
            return lanes
    return None


def _pick_tile_rows(rows, lanes, itemsize):
    """Tile row count: (8,128)-aligned, ~2 MiB, and grid >= 2 when possible."""
    if rows <= 8:
        return rows                      # single block == full array (allowed)
    target = max(8, (_TARGET_TILE_BYTES // (lanes * itemsize)) // 8 * 8)
    half = max(8, (rows // 2) // 8 * 8)  # cap so the grid has >= 2 steps (v7x megacore)
    return min(target, half)


def _run_elementwise(x2d, tile_rows, *, allow_fusion=False):
    rows, lanes = x2d.shape
    grid = (pl.cdiv(rows, tile_rows),)   # last block may overhang (masked by Pallas)
    return pl.pallas_call(
        _tanh_scale_kernel,
        out_shape=jax.ShapeDtypeStruct((rows, lanes), x2d.dtype),
        grid_spec=pltpu.PrefetchScalarGridSpec(
            num_scalar_prefetch=0,
            grid=grid,
            in_specs=[pl.BlockSpec((tile_rows, lanes), lambda i: (i, 0))],
            out_specs=pl.BlockSpec((tile_rows, lanes), lambda i: (i, 0)),
        ),
        compiler_params=pltpu.CompilerParams(
            dimension_semantics=("parallel",),
            vmem_limit_bytes=_VMEM_LIMIT_BYTES,
            allow_input_fusion=[True] if allow_fusion else None,
        ),
    )(x2d)


@jax.jit
def inpaint_generator_forward(x):
    """Forward pass of InpaintGenerator.

    x: [N, C, H, W] float32 (NCHW, PyTorch convention).
    returns: [N, C, H, W] float32, values in (0, 1).
    """
    n, c, h, w = x.shape
    total = n * c * h * w
    itemsize = jnp.dtype(x.dtype).itemsize

    lanes = _pick_lanes(total)
    if lanes is not None:
        # Common path: reshape is a free bitcast; zero extra HBM traffic.
        rows = total // lanes
        tile_rows = _pick_tile_rows(rows, lanes, itemsize)
        y2d = _run_elementwise(x.reshape(rows, lanes), tile_rows)
        return y2d.reshape(n, c, h, w)

    # Ragged fallback: pad only to the next multiple of 128 lanes; the pad is
    # allowed to fuse into the pallas_call input pipeline (no materialized copy).
    lanes = 128
    rows = pl.cdiv(total, lanes)
    padded_total = rows * lanes
    tile_rows = _pick_tile_rows(rows, lanes, itemsize)
    x_flat = jnp.pad(x.reshape(total), (0, padded_total - total))
    y2d = _run_elementwise(x_flat.reshape(rows, lanes), tile_rows, allow_fusion=True)
    return y2d.reshape(padded_total)[:total].reshape(n, c, h, w)


if __name__ == "__main__":
    key = jax.random.PRNGKey(0)
    k1, k2 = jax.random.split(key)

    # Small NCHW input consistent with an image-inpainting generator input.
    # total = 2048 = 2 x 1024 -> lanes=1024, rows=2, single full-array block.
    x = jax.random.normal(k1, (2, 4, 16, 16), dtype=jnp.float32)
    y = jax.block_until_ready(inpaint_generator_forward(x))
    y_ref = (jnp.tanh(x) + 1.0) / 2.0
    assert y.shape == x.shape
    assert jnp.allclose(y, y_ref, atol=1e-5, rtol=1e-5)

    # Second shape exercising the multi-tile / overhanging-last-block path
    # (total = 23040 = 45 x 512 -> lanes=512, rows=45, grid of 3 blocks).
    x2 = jax.random.normal(k2, (2, 3, 64, 60), dtype=jnp.float32)
    y2 = jax.block_until_ready(inpaint_generator_forward(x2))
    y2_ref = (jnp.tanh(x2) + 1.0) / 2.0
    assert y2.shape == x2.shape
    assert jnp.allclose(y2, y2_ref, atol=1e-5, rtol=1e-5)

    print("KERNEL_OK")
</pallas_src>

<mosaic_0001>
module attributes {stable_mosaic.version = 11 : i64} {
  func.func @_tanh_scale_kernel(%arg0: i32, %arg1: memref<2x1024xf32, #tpu.memory_space<vmem>>, %arg2: memref<2x1024xf32, #tpu.memory_space<vmem>>) attributes {dimension_semantics = [#tpu.dimension_semantics<parallel>], iteration_bounds = array<i64: 1>, scalar_prefetch = 0 : i64, scratch_operands = 0 : i64, tpu.core_type = #tpu.core_type<tc>, window_params = [{transform_indices = @transform_0, window_bounds = array<i64: 2, 1024>}, {transform_indices = @transform_1, window_bounds = array<i64: 2, 1024>}]} {
    %c0 = arith.constant 0 : index
    %c0_0 = arith.constant 0 : index
    %0 = vector.load %arg1[%c0, %c0_0] : memref<2x1024xf32, #tpu.memory_space<vmem>>, vector<2x1024xf32>
    %1 = math.tanh %0 : vector<2x1024xf32>
    %cst = arith.constant 5.000000e-01 : f32
    %2 = vector.broadcast %cst : f32 to vector<2x1024xf32>
    %3 = arith.mulf %1, %2 : vector<2x1024xf32>
    %cst_1 = arith.constant 5.000000e-01 : f32
    %4 = vector.broadcast %cst_1 : f32 to vector<2x1024xf32>
    %5 = arith.addf %3, %4 : vector<2x1024xf32>
    %c0_2 = arith.constant 0 : index
    %c0_3 = arith.constant 0 : index
    %6 = vector.load %arg2[%c0_2, %c0_3] : memref<2x1024xf32, #tpu.memory_space<vmem>>, vector<2x1024xf32>
    tpu.vector_store %arg2[%c0_2, %c0_3], %5 {strides = array<i32>} : memref<2x1024xf32, #tpu.memory_space<vmem>>, vector<2x1024xf32>,
    return
  }
  func.func @transform_0(%arg0: i32) -> (i32, i32) {
    %c0_i32 = arith.constant 0 : i32
    %c0_i32_0 = arith.constant 0 : i32
    return %arg0, %c0_i32 : i32, i32
  }
  func.func @transform_1(%arg0: i32) -> (i32, i32) {
    %c0_i32 = arith.constant 0 : i32
    %c0_i32_0 = arith.constant 0 : i32
    return %arg0, %c0_i32 : i32, i32
  }
}

</mosaic_0001>

<bundles_post_ra>
// kernel: inpaint_generator_forward.1
= control target key start
LH: loop header
LB: loop body
LE: loop exit
PB: predicated region body
PF: predicated region fallthrough
CT: control target
= control target key end

     0   :  { %s48_s0 = inlined_call_operand.vmem [shape: f32[2,1024], index: 0, kind: input, shape index: {}]   ;;  %s49_s1 = inlined_call_operand.vmem [shape: f32[2,1024], index: 1, kind: output, shape index: {}]  }
   0x1   :  { %v8_v0 = vld [vmem:[%s48_s0] sm:$0xff]  ;;  %v9_v1 = vld [vmem:[%s48_s0 + $0x8] sm:$0xff] }
   0x2   :  { %22 = vtanh.f32 %v8_v0 }
   0x3   :  { %24 = vtanh.f32 %v9_v1 }
   0xc   :  { %v23_v2 = vpop.eup %22 }
   0xd   :  { %v25_v3 = vpop.eup %24  ;;  %v12_v4 = vmul.f32 0.5, %v23_v2 }
   0xe   :  { %v13_v5 = vmul.f32 0.5, %v25_v3 }
   0xf   :  { %v14_v6 = vadd.f32 0.5, %v12_v4 }
  0x10   :  { %v15_v7 = vadd.f32 0.5, %v13_v5 }
  0x11   :  { %16 = vst [vmem:[%s49_s1] sm:$0xff] %v14_v6 }
  0x12   :  { %17 = vst [vmem:[%s49_s1 + $0x8] sm:$0xff] %v15_v7 }

</bundles_post_ra>
